<compile_context>
chip_gen: v7x
topology: tpu7x:2x2x1
jax: 0.10.0
libtpu: 0.0.40
codegen_flags: <defaults>
</compile_context>

<pallas_src>
import functools

import jax
import jax.numpy as jnp
from jax.experimental import pallas as pl
from jax.experimental.pallas import tpu as pltpu  # noqa: F401  (kept for TPU-specific tuning hooks)


def _round_up(x, m):
    return (x + m - 1) // m * m


# ----------------------------- Pallas kernels ------------------------------


def _fused_backbone_head_kernel(B, HW, patches_ref, cw_ref, cb_ref, hw_ref, hb_ref,
                                feat_ref, out_ref):
    # patches_ref: (B*HW, Kp) bf16   im2col patches for the whole batch
    # cw_ref:      (Kp, Fp)   bf16   conv weight, im2col layout, zero-padded
    # cb_ref:      (1, Fp)    f32    conv bias, zero-padded
    # hw_ref:      (Fp, Cp)   f32    head weight (W.T), zero-padded
    # hb_ref:      (1, Cp)    f32    head bias, zero-padded
    # feat_ref:    (B, Fp)    f32    pooled features (padded cols stay 0)
    # out_ref:     (B, Cp)    f32    cluster-head logits (padded cols stay 0)

    # conv3x3 as one whole-batch MXU matmul, f32 accumulation.
    conv = jnp.dot(patches_ref[...], cw_ref[...],
                   preferred_element_type=jnp.float32)               # (B*HW, Fp)
    act = jnp.maximum(conv + cb_ref[...], 0.0)                       # ReLU, f32

    # Global average pool per image: sum over HW, then one scalar multiply.
    feat = jnp.sum(act.reshape(B, HW, act.shape[-1]), axis=1) * (1.0 / HW)  # (B, Fp)
    feat_ref[...] = feat

    # Fused cluster head: y = feat @ W.T + b  (lane-dense padded output).
    out_ref[...] = (jnp.dot(feat, hw_ref[...], preferred_element_type=jnp.float32)
                    + hb_ref[...])


def _head_kernel(f_ref, w_ref, b_ref, o_ref):
    # Standalone head (only used for the 'head' forward pass, where it IS the
    # whole forward). f_ref: (B, Fp), w_ref: (Fp, Cp), b_ref: (1, Cp), o_ref: (B, Cp).
    o_ref[...] = (jnp.dot(f_ref[...], w_ref[...], preferred_element_type=jnp.float32)
                  + b_ref[...])


# ----------------------------- Wrappers ------------------------------------


def _im2col_3x3(x_nchw, k_pad, dtype):
    """NCHW -> (B*H*W, k_pad) patches for 3x3 conv, pad=1, stride=1.

    K-axis ordering is (ky*3 + kx)*C + c (matches the weight prep below).
    Emitted directly in the final flattened layout and target dtype.
    """
    B, C, H, W = x_nchw.shape
    xp = jnp.pad(x_nchw, ((0, 0), (0, 0), (1, 1), (1, 1)))
    xp = xp.transpose(0, 2, 3, 1)                                    # (B, H+2, W+2, C)
    taps = [xp[:, ky:ky + H, kx:kx + W, :] for ky in range(3) for kx in range(3)]
    p = jnp.concatenate(taps, axis=-1).reshape(B * H * W, 9 * C)     # (B*HW, 9C)
    p = jnp.pad(p, ((0, 0), (0, k_pad - 9 * C)))
    return p.astype(dtype)


def _prep_fused_params(conv_w, conv_b, head_w, head_b):
    F, C = conv_w.shape[0], conv_w.shape[1]
    NC = head_w.shape[0]
    K = 9 * C
    Kp = _round_up(K, 64)     # dense MXU contraction operands
    Fp = _round_up(F, 128)    # lane-dense feature dim -> unmasked vst
    Cp = _round_up(NC, 128)   # lane-dense class dim
    # conv_w (F, C, 3, 3) -> (ky, kx, c, f) -> (9C, F), zero-pad, bf16.
    w_conv = conv_w.transpose(2, 3, 1, 0).reshape(K, F)
    w_conv = jnp.pad(w_conv, ((0, Kp - K), (0, Fp - F))).astype(jnp.bfloat16)
    b_conv = jnp.pad(conv_b.reshape(1, F), ((0, 0), (0, Fp - F))).astype(jnp.float32)
    # head: y = x @ W.T + b  (zero rows/cols in the padding keep padded outputs at 0).
    w_head = jnp.pad(head_w.T, ((0, Fp - F), (0, Cp - NC))).astype(jnp.float32)
    b_head = jnp.pad(head_b.reshape(1, NC), ((0, 0), (0, Cp - NC))).astype(jnp.float32)
    return (w_conv, b_conv, w_head, b_head), (Kp, F, Fp, NC, Cp)


def backbone_head_forward(x_nchw, conv_w, conv_b, head_w, head_b):
    """Fused backbone (conv3x3 + ReLU + global avg pool) + cluster head.

    Returns (features [B, F], logits [B, num_classes])."""
    B, C, H, W = x_nchw.shape
    HW = H * W
    (w_conv, b_conv, w_head, b_head), (Kp, F, Fp, NC, Cp) = _prep_fused_params(
        conv_w, conv_b, head_w, head_b)
    patches = _im2col_3x3(x_nchw, Kp, jnp.bfloat16)                  # (B*HW, Kp) bf16

    kernel = functools.partial(_fused_backbone_head_kernel, B, HW)
    feat_p, out_p = pl.pallas_call(
        kernel,
        out_shape=(jax.ShapeDtypeStruct((B, Fp), jnp.float32),
                   jax.ShapeDtypeStruct((B, Cp), jnp.float32)),
    )(patches, w_conv, b_conv, w_head, b_head)
    return feat_p[:, :F], out_p[:, :NC]


def head_forward(features, head_w, head_b):
    """Single nn.Linear(feature_dim, num_classes): y = x @ W.T + b (head-only pass)."""
    B, F = features.shape
    NC = head_w.shape[0]
    Fp = _round_up(F, 128)
    Cp = _round_up(NC, 128)
    f_p = jnp.pad(features.astype(jnp.float32), ((0, 0), (0, Fp - F)))
    w_p = jnp.pad(head_w.T, ((0, Fp - F), (0, Cp - NC))).astype(jnp.float32)
    b_p = jnp.pad(head_b.reshape(1, NC), ((0, 0), (0, Cp - NC))).astype(jnp.float32)
    out_p = pl.pallas_call(
        _head_kernel,
        out_shape=jax.ShapeDtypeStruct((B, Cp), jnp.float32),
    )(f_p, w_p, b_p)
    return out_p[:, :NC]


def clustering_model_forward(params, x, forward_pass="default"):
    """Mirrors ClusteringModel.forward semantics."""
    conv_w, conv_b, head_w, head_b = (
        params["conv_w"], params["conv_b"], params["head_w"], params["head_b"]
    )
    if forward_pass == "default":
        _, out = backbone_head_forward(x, conv_w, conv_b, head_w, head_b)
        return [out]                                  # ModuleList of one head
    elif forward_pass == "backbone":
        feats, _ = backbone_head_forward(x, conv_w, conv_b, head_w, head_b)
        return feats
    elif forward_pass == "head":
        return [head_forward(x, head_w, head_b)]
    elif forward_pass == "return_all":
        feats, out = backbone_head_forward(x, conv_w, conv_b, head_w, head_b)
        return {"features": feats, "output": [out]}
    else:
        raise ValueError("Invalid forward pass {}".format(forward_pass))


# ----------------------------- Main ----------------------------------------


if __name__ == "__main__":
    B, C, H, W = 2, 4, 16, 16
    feature_dim, num_classes = 32, 10

    key = jax.random.PRNGKey(0)
    k_x, k_cw, k_cb, k_hw, k_hb = jax.random.split(key, 5)

    x = jax.random.normal(k_x, (B, C, H, W), dtype=jnp.float32)      # NCHW like PyTorch

    # Deterministic synthetic parameters (shapes follow nn.Conv2d / nn.Linear).
    params = {
        "conv_w": 0.1 * jax.random.normal(k_cw, (feature_dim, C, 3, 3), jnp.float32),
        "conv_b": 0.1 * jax.random.normal(k_cb, (feature_dim,), jnp.float32),
        "head_w": 0.1 * jax.random.normal(k_hw, (num_classes, feature_dim), jnp.float32),
        "head_b": 0.1 * jax.random.normal(k_hb, (num_classes,), jnp.float32),
    }

    fwd = jax.jit(clustering_model_forward, static_argnames=("forward_pass",))

    # default pass: backbone -> list of head outputs
    out_default = fwd(params, x, forward_pass="default")
    # backbone-only pass
    feats = fwd(params, x, forward_pass="backbone")
    # head-only pass (input is already features)
    out_head = fwd(params, feats, forward_pass="head")
    # return_all pass
    out_all = fwd(params, x, forward_pass="return_all")

    jax.block_until_ready(out_default[0])
    jax.block_until_ready(feats)
    jax.block_until_ready(out_head[0])
    jax.block_until_ready(out_all["output"][0])

    assert out_default[0].shape == (B, num_classes)
    assert feats.shape == (B, feature_dim)
    assert out_head[0].shape == (B, num_classes)
    assert out_all["features"].shape == (B, feature_dim)
    assert out_all["output"][0].shape == (B, num_classes)

    print("KERNEL_OK")
</pallas_src>

<mosaic_0001>
module attributes {stable_mosaic.version = 11 : i64} {
  func.func @_fused_backbone_head_kernel(%arg0: memref<512x64xbf16, #tpu.memory_space<vmem>>, %arg1: memref<64x128xbf16, #tpu.memory_space<vmem>>, %arg2: memref<1x128xf32, #tpu.memory_space<vmem>>, %arg3: memref<128x128xf32, #tpu.memory_space<vmem>>, %arg4: memref<1x128xf32, #tpu.memory_space<vmem>>, %arg5: memref<2x128xf32, #tpu.memory_space<vmem>>, %arg6: memref<2x128xf32, #tpu.memory_space<vmem>>) attributes {dimension_semantics = [], scalar_prefetch = 0 : i64, scratch_operands = 0 : i64, tpu.core_type = #tpu.core_type<tc>} {
    %c0 = arith.constant 0 : index
    %c0_0 = arith.constant 0 : index
    %0 = vector.load %arg0[%c0, %c0_0] : memref<512x64xbf16, #tpu.memory_space<vmem>>, vector<512x64xbf16>
    %c0_1 = arith.constant 0 : index
    %c0_2 = arith.constant 0 : index
    %1 = vector.load %arg1[%c0_1, %c0_2] : memref<64x128xbf16, #tpu.memory_space<vmem>>, vector<64x128xbf16>
    %cst = arith.constant dense<0.000000e+00> : vector<512x128xf32>
    %2 = tpu.matmul %0, %1, %cst {dimension_numbers = #tpu.dot_dimension_numbers<[1], [0], [0], [1], [0, 0, 1, 1], [], []>} : vector<512x64xbf16>, vector<64x128xbf16>, vector<512x128xf32> -> vector<512x128xf32>
    %c0_3 = arith.constant 0 : index
    %c0_4 = arith.constant 0 : index
    %3 = vector.load %arg2[%c0_3, %c0_4] : memref<1x128xf32, #tpu.memory_space<vmem>>, vector<1x128xf32>
    %4 = vector.broadcast %3 : vector<1x128xf32> to vector<512x128xf32>
    %5 = arith.addf %2, %4 : vector<512x128xf32>
    %cst_5 = arith.constant 0.000000e+00 : f32
    %6 = vector.broadcast %cst_5 : f32 to vector<512x128xf32>
    %7 = arith.maximumf %5, %6 : vector<512x128xf32>
    %8 = vector.shape_cast %7 : vector<512x128xf32> to vector<2x256x128xf32>
    %cst_6 = arith.constant dense<0.000000e+00> : vector<2x128xf32>
    %9 = vector.multi_reduction <add>, %8, %cst_6 [1] : vector<2x256x128xf32> to vector<2x128xf32>
    %cst_7 = arith.constant 3.906250e-03 : f32
    %10 = vector.broadcast %cst_7 : f32 to vector<2x128xf32>
    %11 = arith.mulf %9, %10 : vector<2x128xf32>
    %c0_8 = arith.constant 0 : index
    %c0_9 = arith.constant 0 : index
    %12 = vector.load %arg5[%c0_8, %c0_9] : memref<2x128xf32, #tpu.memory_space<vmem>>, vector<2x128xf32>
    tpu.vector_store %arg5[%c0_8, %c0_9], %11 {strides = array<i32>} : memref<2x128xf32, #tpu.memory_space<vmem>>, vector<2x128xf32>,
    %c0_10 = arith.constant 0 : index
    %c0_11 = arith.constant 0 : index
    %13 = vector.load %arg3[%c0_10, %c0_11] : memref<128x128xf32, #tpu.memory_space<vmem>>, vector<128x128xf32>
    %cst_12 = arith.constant dense<0.000000e+00> : vector<2x128xf32>
    %14 = tpu.matmul %11, %13, %cst_12 {dimension_numbers = #tpu.dot_dimension_numbers<[1], [0], [0], [1], [0, 0, 1, 1], [], []>} : vector<2x128xf32>, vector<128x128xf32>, vector<2x128xf32> -> vector<2x128xf32>
    %c0_13 = arith.constant 0 : index
    %c0_14 = arith.constant 0 : index
    %15 = vector.load %arg4[%c0_13, %c0_14] : memref<1x128xf32, #tpu.memory_space<vmem>>, vector<1x128xf32>
    %16 = vector.broadcast %15 : vector<1x128xf32> to vector<2x128xf32>
    %17 = arith.addf %14, %16 : vector<2x128xf32>
    %c0_15 = arith.constant 0 : index
    %c0_16 = arith.constant 0 : index
    %18 = vector.load %arg6[%c0_15, %c0_16] : memref<2x128xf32, #tpu.memory_space<vmem>>, vector<2x128xf32>
    tpu.vector_store %arg6[%c0_15, %c0_16], %17 {strides = array<i32>} : memref<2x128xf32, #tpu.memory_space<vmem>>, vector<2x128xf32>,
    return
  }
}

</mosaic_0001>

<bundles_post_ra>
// kernel: clustering_model_forward.1
= control target key start
LH: loop header
LB: loop body
LE: loop exit
PB: predicated region body
PF: predicated region fallthrough
CT: control target
= control target key end

     0   :  { %12 = vsyncpa [#allocation3], 0  ;;  %vm288_vm0 = vcmask 523264   ;;  %s1713_s0 = inlined_call_operand.vmem [shape: bf16[512,64], index: 0, kind: input, shape index: {}]   ;;  %s1714_s1 = inlined_call_operand.vmem [shape: bf16[64,128], index: 1, kind: input, shape index: {}]   ;;  %s1715_s2 = inlined_call_operand.vmem [shape: f32[1,128], index: 2, kind: input, shape index: {}]   ;;  %s1716_s3 = inlined_call_operand.vmem [shape: f32[128,128], index: 3, kind: input, shape index: {}]   ;;  %s1717_s4 = inlined_call_operand.vmem [shape: f32[1,128], index: 4, kind: input, shape index: {}]   ;;  %s1718_s5 = inlined_call_operand.hbm [shape: f32[2,128], index: 5, kind: output, shape index: {0}]   ;;  %s1719_s6 = inlined_call_operand.hbm [shape: f32[2,128], index: 6, kind: output, shape index: {1}]  }
   0x1   :  { %v1209_v0 = vld [vmem:[%s1714_s1] sm:$0xff]   ;;  %v1210_v1 = vld [vmem:[%s1714_s1 + $0x8] sm:$0xff]   ;;  %v1211_v2 = vld [vmem:[%s1714_s1 + $0x10] sm:$0xff]  }
   0x2   :  { %1065 = vmatprep.subr.bf16.mxu0 %v1209_v0  ;;  %1196 = vmatprep.subr.bf16.mxu1 %v1209_v0  ;;  %v1213_v3 = vld [vmem:[%s1713_s0] sm:$0xff]   ;;  %v1212_v4 = vld [vmem:[%s1714_s1 + $0x18] sm:$0xff]   ;;  %v1214_v5 = vld [vmem:[%s1713_s0 + $0x8] sm:$0xff]  }
   0x3   :  { %1066 = vmatpush3.bf16.msra.mxu0 %v1209_v0  ;;  %1200 = vmatpush3.bf16.msra.mxu1 %v1209_v0  ;;  %v1215_v6 = vld [vmem:[%s1713_s0 + $0x10] sm:$0xff]   ;;  %v1216_v7 = vld [vmem:[%s1713_s0 + $0x18] sm:$0xff]   ;;  %v1217_v8 = vld [vmem:[%s1713_s0 + $0x20] sm:$0xff]  }
   0x4   :  { %1067 = vmatprep.subr.bf16.mxu0 %v1210_v1  ;;  %1197 = vmatprep.subr.bf16.mxu1 %v1210_v1  ;;  %v1231_v9 = vld [vmem:[%s1713_s0 + $0x90] sm:$0xff]   ;;  %v1232_v10 = vld [vmem:[%s1713_s0 + $0x98] sm:$0xff]   ;;  %v1233_v11 = vld [vmem:[%s1713_s0 + $0xa0] sm:$0xff]  }
   0x5   :  { %1073 = vmatprep.mubr.msk.bf16.mxu0 %vm288_vm0, %v1213_v3  ;;  %1109 = vmatprep.mubr.msk.bf16.mxu1 %vm288_vm0, %v1231_v9  ;;  %v1218_v12 = vld [vmem:[%s1713_s0 + $0x28] sm:$0xff]   ;;  %v1235_v14 = vld [vmem:[%s1713_s0 + $0xb0] sm:$0xff]  }
   0x6   :  { %v1234_v13 = vld [vmem:[%s1713_s0 + $0xa8] sm:$0xff]   ;;  %v1219_v15 = vld [vmem:[%s1713_s0 + $0x30] sm:$0xff]  }
   0x7   :  { %1068 = vmatpush3.bf16.msra.mxu0 %v1210_v1  ;;  %1201 = vmatpush3.bf16.msra.mxu1 %v1210_v1 }
   0x8   :  { %1069 = vmatprep.subr.bf16.mxu0 %v1211_v2  ;;  %1198 = vmatprep.subr.bf16.mxu1 %v1211_v2 }
   0xb   :  { %1070 = vmatpush3.bf16.msra.mxu0 %v1211_v2  ;;  %1202 = vmatpush3.bf16.msra.mxu1 %v1211_v2 }
   0xc   :  { %1071 = vmatprep.subr.bf16.mxu0 %v1212_v4  ;;  %1199 = vmatprep.subr.bf16.mxu1 %v1212_v4 }
   0xf   :  { %1072 = vmatpush3.bf16.msra.mxu0 %v1212_v4  ;;  %1203 = vmatpush3.bf16.msra.mxu1 %v1212_v4 }
  0x12   :  { %1074 = vmatmul.mubr.msk.bf16.vlgmr.msra.gmra.mrb[0].mxu0 %vm288_vm0, %v1214_v5  ;;  %1110 = vmatmul.mubr.msk.bf16.vlgmr.msra.gmra.mrb[0].mxu1 %vm288_vm0, %v1232_v10 }
  0x13   :  { %1077 = vmatprep.mubr.msk.bf16.mxu0 %vm288_vm0, %v1215_v6  ;;  %1113 = vmatprep.mubr.msk.bf16.mxu1 %vm288_vm0, %v1233_v11 }
  0x1a   :  { %1078 = vmatmul.mubr.msk.bf16.gmra.mrb[4].mxu0 %vm288_vm0, %v1216_v7  ;;  %1114 = vmatmul.mubr.msk.bf16.gmra.mrb[4].mxu1 %vm288_vm0, %v1234_v13 }
  0x1b   :  { %1081 = vmatprep.mubr.msk.bf16.mxu0 %vm288_vm0, %v1217_v8  ;;  %1117 = vmatprep.mubr.msk.bf16.mxu1 %vm288_vm0, %v1235_v14 }
  0x22   :  { %1082 = vmatmul.mubr.msk.bf16.gmra.mrb[8].mxu0 %vm288_vm0, %v1218_v12 }
  0x23   :  { %1085 = vmatprep.mubr.msk.bf16.mxu0 %vm288_vm0, %v1219_v15 }
  0x24   :  { %13 = vsyncpa [#allocation5], 0  ;;  %v1236_v16 = vld [vmem:[%s1713_s0 + $0xb8] sm:$0xff]   ;;  %v1237_v18 = vld [vmem:[%s1713_s0 + $0xc0] sm:$0xff]   ;;  %v1293_v38 = vmov 0.0|0.0   ;;  %vm1294_vm1 = vmmov 0  }
  0x25   :  { %v1220_v17 = vld [vmem:[%s1713_s0 + $0x38] sm:$0xff]   ;;  %v1221_v19 = vld [vmem:[%s1713_s0 + $0x40] sm:$0xff]   ;;  %1118 = vmatmul.mubr.msk.bf16.gmra.mrb[8].mxu1 %vm288_vm0, %v1236_v16  ;;  %v1238_v20 = vld [vmem:[%s1713_s0 + $0xc8] sm:$0xff]   ;;  %1172 = vmatprep.subr.bf16.mxu1 %v1293_v38  ;;  %vm816_vm2 = vcmask 1041409  }
  0x26   :  { %1121 = vmatprep.mubr.msk.bf16.mxu1 %vm288_vm0, %v1237_v18  ;;  %v1222_v21 = vld [vmem:[%s1713_s0 + $0x48] sm:$0xff]   ;;  %v1239_v22 = vld [vmem:[%s1713_s0 + $0xd0] sm:$0xff]   ;;  %v1240_v24 = vld [vmem:[%s1713_s0 + $0xd8] sm:$0xff]  }
  0x27   :  { %v1223_v23 = vld [vmem:[%s1713_s0 + $0x50] sm:$0xff]   ;;  %v1224_v25 = vld [vmem:[%s1713_s0 + $0x58] sm:$0xff]   ;;  %v1241_v26 = vld [vmem:[%s1713_s0 + $0xe0] sm:$0xff]  }
  0x28   :  { %v1225_v27 = vld [vmem:[%s1713_s0 + $0x60] sm:$0xff]   ;;  %v1242_v28 = vld [vmem:[%s1713_s0 + $0xe8] sm:$0xff]   ;;  %v1243_v30 = vld [vmem:[%s1713_s0 + $0xf0] sm:$0xff]  }
  0x29   :  { %v1226_v29 = vld [vmem:[%s1713_s0 + $0x68] sm:$0xff]   ;;  %v1227_v31 = vld [vmem:[%s1713_s0 + $0x70] sm:$0xff]   ;;  %v1244_v32 = vld [vmem:[%s1713_s0 + $0xf8] sm:$0xff]  }
  0x2a   :  { %1086 = vmatmul.mubr.msk.bf16.gmra.mrb[12].mxu0 %vm288_vm0, %v1220_v17  ;;  %v1228_v33 = vld [vmem:[%s1713_s0 + $0x78] sm:$0xff]   ;;  %v1229_v34 = vld [vmem:[%s1713_s0 + $0x80] sm:$0xff]   ;;  %v1230_v35 = vld [vmem:[%s1713_s0 + $0x88] sm:$0xff]  }
  0x2b   :  { %1089 = vmatprep.mubr.msk.bf16.mxu0 %vm288_vm0, %v1221_v19  ;;  %v820_v36 = vld [vmem:[%s1716_s3] sm:$0xff]  ;;  %v821_v37 = vld [vmem:[%s1716_s3 + $0x8] sm:$0xff]  ;;  %v822_v40 = vld [vmem:[%s1716_s3 + $0x10] sm:$0xff] }
  0x2c   :  { %v1173_v39 = vpack.c.bf16 %v821_v37, %v820_v36  ;;  %v823_v41 = vld [vmem:[%s1716_s3 + $0x18] sm:$0xff]  ;;  %v824_v43 = vld [vmem:[%s1716_s3 + $0x20] sm:$0xff]  ;;  %v825_v44 = vld [vmem:[%s1716_s3 + $0x28] sm:$0xff] }
  0x2d   :  { %1122 = vmatmul.mubr.msk.bf16.gmra.mrb[12].mxu1 %vm288_vm0, %v1238_v20  ;;  %v1176_v42 = vpack.c.bf16 %v823_v41, %v822_v40  ;;  %v1179_v45 = vpack.c.bf16 %v825_v44, %v824_v43  ;;  %v826_v46 = vld [vmem:[%s1716_s3 + $0x30] sm:$0xff]  ;;  %v827_v47 = vld [vmem:[%s1716_s3 + $0x38] sm:$0xff]  ;;  %v1505_v49 = vld [vmem:[%s1715_s2] ss:$0 sm:$0xff] }
  0x2e   :  { %1125 = vmatprep.mubr.msk.bf16.mxu1 %vm288_vm0, %v1239_v22  ;;  %1174 = vmatpush3.bf16.msra.mxu1 %v1173_v39  ;;  %v1182_v48 = vpack.c.bf16 %v827_v47, %v826_v46  ;;  %v828_v55 = vld [vmem:[%s1716_s3 + $0x40] sm:$0xff]  ;;  %v829_v56 = vld [vmem:[%s1716_s3 + $0x48] sm:$0xff]  ;;  %v830_v0 = vld [vmem:[%s1716_s3 + $0x50] sm:$0xff] }
  0x2f   :  { %1175 = vmatprep.subr.bf16.mxu1 %v1293_v38  ;;  %v1185_v59 = vpack.c.bf16 %v829_v56, %v828_v55  ;;  %v831_v1 = vld [vmem:[%s1716_s3 + $0x58] sm:$0xff]  ;;  %v832_v15 = vld [vmem:[%s1716_s3 + $0x60] sm:$0xff]  ;;  %v833_v16 = vld [vmem:[%s1716_s3 + $0x68] sm:$0xff] }
  0x30   :  { %v1188_v6 = vpack.c.bf16 %v831_v1, %v830_v0  ;;  %v835_v22 = vld [vmem:[%s1716_s3 + $0x78] sm:$0xff] }
  0x32   :  { %1090 = vmatmul.mubr.msk.bf16.gmra.mrb[16].mxu0 %vm288_vm0, %v1222_v21  ;;  %1177 = vmatpush3.bf16.msra.mxu1 %v1176_v42  ;;  %v834_v21 = vld [vmem:[%s1716_s3 + $0x70] sm:$0xff]  ;;  %s1296_s3 = smov [#allocation2]  }
  0x33   :  { %1093 = vmatprep.mubr.msk.bf16.mxu0 %vm288_vm0, %v1223_v23  ;;  %1178 = vmatprep.subr.bf16.mxu1 %v1293_v38  ;;  %s920_s24 = sshll.u32 %s1296_s3, 4  ;;  %s921_s24 = int_to_ptr.vmem [resolvable:$true] %s920_s24 }
  0x34   :  { %s1245_s25 = scalar_lea.vmem %s921_s24, 32  ;;  %p1250_p1 = scmp.lt.s32.totalorder %s921_s24, %s921_s24 }
  0x35   :  { %1126 = vmatmul.mubr.msk.bf16.gmra.mrb[16].mxu1 %vm288_vm0, %v1240_v24  ;;  %v1191_v24 = vpack.c.bf16 %v833_v16, %v832_v15  ;;  %p1246_p0 = scmp.ne.s32.totalorder %s921_s24, %s1245_s25  ;;  %p1251_p2 = scmp.lt.s32.totalorder %s1245_s25, %s1245_s25 }
  0x36   :  { %1129 = vmatprep.mubr.msk.bf16.mxu1 %vm288_vm0, %v1241_v26  ;;  %1180 = vmatpush3.bf16.msra.mxu1 %v1179_v45 }
  0x37   :  { %1181 = vmatprep.subr.bf16.mxu1 %v1293_v38  ;;  %p1252_p3 = por %p1251_p2, %p1250_p1 }
  0x39   :  { %p1253_p4 = pnand %p1252_p3, %p1246_p0 }
  0x3a   :  { %1094 = vmatmul.mubr.msk.bf16.gmra.mrb[20].mxu0 %vm288_vm0, %v1224_v25  ;;  %1183 = vmatpush3.bf16.msra.mxu1 %v1182_v48 }
  0x3b   :  { %1097 = vmatprep.mubr.msk.bf16.mxu0 %vm288_vm0, %v1225_v27  ;;  %1184 = vmatprep.subr.bf16.mxu1 %v1293_v38 }
  0x3d   :  { %1130 = vmatmul.mubr.msk.bf16.gmra.mrb[20].mxu1 %vm288_vm0, %v1242_v28  ;;  %v1194_v28 = vpack.c.bf16 %v835_v22, %v834_v21 }
  0x3e   :  { %1133 = vmatprep.mubr.msk.bf16.mxu1 %vm288_vm0, %v1243_v30  ;;  %1186 = vmatpush3.bf16.msra.mxu1 %v1185_v59 }
  0x3f   :  { %1187 = vmatprep.subr.bf16.mxu1 %v1293_v38 }
  0x42   :  { %1098 = vmatmul.mubr.msk.bf16.gmra.mrb[24].mxu0 %vm288_vm0, %v1226_v29  ;;  %1189 = vmatpush3.bf16.msra.mxu1 %v1188_v6  ;;  %v1295_v29 = vmov 0.0  }
  0x43   :  { %1101 = vmatprep.mubr.msk.bf16.mxu0 %vm288_vm0, %v1227_v31  ;;  %1190 = vmatprep.subr.bf16.mxu1 %v1293_v38 }
  0x45   :  { %1134 = vmatmul.mubr.msk.bf16.gmra.mrb[24].mxu1 %vm288_vm0, %v1244_v32 }
  0x46   :  { %1192 = vmatpush3.bf16.msra.mxu1 %v1191_v24  ;;  %1169 = vmatprep.mubr.msk.f32.mxu1 %vm1294_vm1, %v1295_v29 }
  0x47   :  { %1193 = vmatprep.subr.bf16.mxu1 %v1293_v38 }
  0x4a   :  { %1102 = vmatmul.mubr.msk.bf16.gmra.mrb[28].mxu0 %vm288_vm0, %v1228_v33  ;;  %1195 = vmatpush3.bf16.msra.mxu1 %v1194_v28 }
  0x4b   :  { %1105 = vmatprep.mubr.msk.bf16.mxu0 %vm288_vm0, %v1229_v34 }
  0x52   :  { %1106 = vmatmul.mubr.msk.bf16.gmra.mrb[32].mxu0 %vm288_vm0, %v1230_v35 }
  0xe5   :  { %v1075_v50 = vpop.f32.mrb[0].mxu0  ;;  %v1517_v63 = vpop.f32.mrb[0].mxu1 }
  0xe6   :  { %v419_v51 = vpop.f32.mrb[1].mxu0  ;;  %v428_v57 = vadd.f32 %v1075_v50, %v1505_v49  ;;  %v1526_v5 = vpop.f32.mrb[1].mxu1 }
  0xe7   :  { %v420_v52 = vadd.f32 %v1505_v49, %v419_v51  ;;  %v1076_v53 = vpop.f32.mrb[2].mxu0  ;;  %v1528_v8 = vpop.f32.mrb[2].mxu1 }
  0xe8   :  { %v422_v54 = vpop.f32.mrb[3].mxu0  ;;  %v431_v61 = vadd.f32 %v1076_v53, %v1505_v49  ;;  %v676_v2 = vmax.f32 %v428_v57, 0.0  ;;  %v1531_v13 = vpop.f32.mrb[3].mxu1 }
  0xe9   :  { %v423_v58 = vadd.f32 %v1505_v49, %v422_v54  ;;  %v674_v60 = vmax.f32 %v420_v52, 0.0 }
  0xea   :  { %v677_v9 = vmax.f32 %v431_v61, 0.0 }
  0xeb   :  { %v675_v62 = vmax.f32 %v423_v58, 0.0 }
  0xed   :  { %v738_v3 = vadd.f32 %v675_v62, %v674_v60  ;;  %v1079_v4 = vpop.f32.mrb[4].mxu0  ;;  %v1549_v27 = vpop.f32.mrb[4].mxu1 }
  0xee   :  { %v435_v7 = vpop.f32.mrb[5].mxu0  ;;  %v444_v17 = vadd.f32 %v1079_v4, %v1505_v49  ;;  %v1551_v33 = vpop.f32.mrb[5].mxu1 }
  0xef   :  { %v739_v10 = vadd.f32 %v738_v3, %v676_v2  ;;  %v436_v11 = vadd.f32 %v1505_v49, %v435_v7  ;;  %v1080_v12 = vpop.f32.mrb[6].mxu0  ;;  %v1554_v35 = vpop.f32.mrb[6].mxu1 }
  0xf0   :  { %v438_v14 = vpop.f32.mrb[7].mxu0  ;;  %v447_v23 = vadd.f32 %v1080_v12, %v1505_v49  ;;  %v680_v30 = vmax.f32 %v444_v17, 0.0  ;;  %v1557_v41 = vpop.f32.mrb[7].mxu1 }
  0xf1   :  { %v678_v18 = vmax.f32 %v436_v11, 0.0  ;;  %v740_v19 = vadd.f32 %v739_v10, %v677_v9  ;;  %v439_v20 = vadd.f32 %v1505_v49, %v438_v14 }
  0xf2   :  { %v681_v36 = vmax.f32 %v447_v23, 0.0 }
  0xf3   :  { %v741_v25 = vadd.f32 %v740_v19, %v678_v18  ;;  %v679_v26 = vmax.f32 %v439_v20, 0.0 }
  0xf5   :  { %v742_v31 = vadd.f32 %v741_v25, %v679_v26  ;;  %v1083_v32 = vpop.f32.mrb[8].mxu0 }
  0xf6   :  { %v451_v34 = vpop.f32.mrb[9].mxu0  ;;  %v460_v43 = vadd.f32 %v1083_v32, %v1505_v49 }
  0xf7   :  { %v743_v37 = vadd.f32 %v742_v31, %v680_v30  ;;  %v452_v39 = vadd.f32 %v1505_v49, %v451_v34  ;;  %v1084_v40 = vpop.f32.mrb[10].mxu0 }
  0xf8   :  { %v454_v42 = vpop.f32.mrb[11].mxu0  ;;  %v463_v38 = vadd.f32 %v1084_v40, %v1505_v49  ;;  %v1562_v50 = vpop.f32.mrb[8].mxu1  ;;  %v684_v51 = vmax.f32 %v460_v43, 0.0 }
  0xf9   :  { %v682_v44 = vmax.f32 %v452_v39, 0.0  ;;  %v744_v45 = vadd.f32 %v743_v37, %v681_v36  ;;  %v455_v46 = vadd.f32 %v1505_v49, %v454_v42  ;;  %v1564_v54 = vpop.f32.mrb[9].mxu1 }
  0xfa   :  { %v1566_v56 = vpop.f32.mrb[10].mxu1  ;;  %v685_v57 = vmax.f32 %v463_v38, 0.0 }
  0xfb   :  { %v745_v47 = vadd.f32 %v744_v45, %v682_v44  ;;  %v683_v48 = vmax.f32 %v455_v46, 0.0  ;;  %v1569_v61 = vpop.f32.mrb[11].mxu1 }
  0xfd   :  { %v746_v52 = vadd.f32 %v745_v47, %v683_v48  ;;  %v1087_v53 = vpop.f32.mrb[12].mxu0 }
  0xfe   :  { %v467_v55 = vpop.f32.mrb[13].mxu0  ;;  %v476_v0 = vadd.f32 %v1087_v53, %v1505_v49 }
  0xff   :  { %v747_v58 = vadd.f32 %v746_v52, %v684_v51  ;;  %v468_v59 = vadd.f32 %v1505_v49, %v467_v55  ;;  %v1088_v60 = vpop.f32.mrb[14].mxu0 }
 0x100   :  { %v470_v62 = vpop.f32.mrb[15].mxu0  ;;  %v479_v6 = vadd.f32 %v1088_v60, %v1505_v49  ;;  %v1574_v9 = vpop.f32.mrb[12].mxu1  ;;  %v688_v10 = vmax.f32 %v476_v0, 0.0 }
 0x101   :  { %v686_v1 = vmax.f32 %v468_v59, 0.0  ;;  %v748_v2 = vadd.f32 %v747_v58, %v685_v57  ;;  %v471_v3 = vadd.f32 %v1505_v49, %v470_v62  ;;  %v1576_v14 = vpop.f32.mrb[13].mxu1 }
 0x102   :  { %v1578_v16 = vpop.f32.mrb[14].mxu1  ;;  %v689_v17 = vmax.f32 %v479_v6, 0.0 }
 0x103   :  { %v749_v4 = vadd.f32 %v748_v2, %v686_v1  ;;  %v687_v7 = vmax.f32 %v471_v3, 0.0  ;;  %v1581_v21 = vpop.f32.mrb[15].mxu1 }
 0x105   :  { %v750_v11 = vadd.f32 %v749_v4, %v687_v7  ;;  %v1091_v12 = vpop.f32.mrb[16].mxu0 }
 0x106   :  { %v483_v15 = vpop.f32.mrb[17].mxu0  ;;  %v492_v23 = vadd.f32 %v1091_v12, %v1505_v49 }
 0x107   :  { %v751_v18 = vadd.f32 %v750_v11, %v688_v10  ;;  %v484_v19 = vadd.f32 %v1505_v49, %v483_v15  ;;  %v1092_v20 = vpop.f32.mrb[18].mxu0 }
 0x108   :  { %v486_v22 = vpop.f32.mrb[19].mxu0  ;;  %v495_v29 = vadd.f32 %v1092_v20, %v1505_v49  ;;  %v1586_v31 = vpop.f32.mrb[16].mxu1  ;;  %v692_v32 = vmax.f32 %v492_v23, 0.0 }
 0x109   :  { %v690_v24 = vmax.f32 %v484_v19, 0.0  ;;  %v752_v25 = vadd.f32 %v751_v18, %v689_v17  ;;  %v487_v26 = vadd.f32 %v1505_v49, %v486_v22  ;;  %v1588_v37 = vpop.f32.mrb[17].mxu1 }
 0x10a   :  { %v1590_v40 = vpop.f32.mrb[18].mxu1  ;;  %v693_v42 = vmax.f32 %v495_v29, 0.0 }
 0x10b   :  { %v753_v28 = vadd.f32 %v752_v25, %v690_v24  ;;  %v691_v30 = vmax.f32 %v487_v26, 0.0  ;;  %v1593_v46 = vpop.f32.mrb[19].mxu1 }
 0x10d   :  { %v754_v34 = vadd.f32 %v753_v28, %v691_v30  ;;  %v1095_v36 = vpop.f32.mrb[20].mxu0 }
 0x10e   :  { %v499_v39 = vpop.f32.mrb[21].mxu0  ;;  %v508_v38 = vadd.f32 %v1095_v36, %v1505_v49 }
 0x10f   :  { %v755_v43 = vadd.f32 %v754_v34, %v692_v32  ;;  %v500_v44 = vadd.f32 %v1505_v49, %v499_v39  ;;  %v1096_v45 = vpop.f32.mrb[22].mxu0 }
 0x110   :  { %v502_v47 = vpop.f32.mrb[23].mxu0  ;;  %v511_v55 = vadd.f32 %v1096_v45, %v1505_v49  ;;  %v1598_v58 = vpop.f32.mrb[20].mxu1  ;;  %v696_v59 = vmax.f32 %v508_v38, 0.0 }
 0x111   :  { %v694_v48 = vmax.f32 %v500_v44, 0.0  ;;  %v756_v51 = vadd.f32 %v755_v43, %v693_v42  ;;  %v503_v52 = vadd.f32 %v1505_v49, %v502_v47  ;;  %v1600_v0 = vpop.f32.mrb[21].mxu1 }
 0x112   :  { %v1602_v2 = vpop.f32.mrb[22].mxu1  ;;  %v697_v3 = vmax.f32 %v511_v55, 0.0 }
 0x113   :  { %v757_v53 = vadd.f32 %v756_v51, %v694_v48  ;;  %v695_v57 = vmax.f32 %v503_v52, 0.0  ;;  %v1605_v10 = vpop.f32.mrb[23].mxu1 }
 0x115   :  { %v758_v60 = vadd.f32 %v757_v53, %v695_v57  ;;  %v1099_v62 = vpop.f32.mrb[24].mxu0 }
 0x116   :  { %v515_v1 = vpop.f32.mrb[25].mxu0  ;;  %v524_v12 = vadd.f32 %v1099_v62, %v1505_v49 }
 0x117   :  { %v759_v4 = vadd.f32 %v758_v60, %v696_v59  ;;  %v516_v6 = vadd.f32 %v1505_v49, %v515_v1  ;;  %v1100_v7 = vpop.f32.mrb[26].mxu0 }
 0x118   :  { %v518_v11 = vpop.f32.mrb[27].mxu0  ;;  %v527_v20 = vadd.f32 %v1100_v7, %v1505_v49  ;;  %v1610_v23 = vpop.f32.mrb[24].mxu1  ;;  %v700_v24 = vmax.f32 %v524_v12, 0.0 }
 0x119   :  { %v698_v15 = vmax.f32 %v516_v6, 0.0  ;;  %v760_v17 = vadd.f32 %v759_v4, %v697_v3  ;;  %v519_v18 = vadd.f32 %v1505_v49, %v518_v11  ;;  %v1612_v28 = vpop.f32.mrb[25].mxu1 }
 0x11a   :  { %v1614_v30 = vpop.f32.mrb[26].mxu1  ;;  %v701_v32 = vmax.f32 %v527_v20, 0.0 }
 0x11b   :  { %v761_v19 = vadd.f32 %v760_v17, %v698_v15  ;;  %v699_v22 = vmax.f32 %v519_v18, 0.0  ;;  %v1617_v42 = vpop.f32.mrb[27].mxu1  ;;  %v564_v18 = vadd.f32 %v1505_v49, %v1526_v5  ;;  %v580_v5 = vadd.f32 %v1505_v49, %v1551_v33 }
 0x11c   :  { %v596_v33 = vadd.f32 %v1505_v49, %v1564_v54  ;;  %v612_v54 = vadd.f32 %v1505_v49, %v1576_v14  ;;  %v628_v14 = vadd.f32 %v1505_v49, %v1588_v37  ;;  %v644_v37 = vadd.f32 %v1505_v49, %v1600_v0 }
 0x11d   :  { %v762_v25 = vadd.f32 %v761_v19, %v699_v22  ;;  %v1103_v26 = vpop.f32.mrb[28].mxu0  ;;  %v660_v0 = vadd.f32 %v1505_v49, %v1612_v28  ;;  %v671_v28 = vadd.f32 %v1614_v30, %v1505_v49 }
 0x11e   :  { %v531_v29 = vpop.f32.mrb[29].mxu0  ;;  %v540_v44 = vadd.f32 %v1103_v26, %v1505_v49  ;;  %v567_v26 = vadd.f32 %v1505_v49, %v1531_v13  ;;  %v583_v13 = vadd.f32 %v1505_v49, %v1557_v41  ;;  %v599_v41 = vadd.f32 %v1505_v49, %v1569_v61 }
 0x11f   :  { %v763_v34 = vadd.f32 %v762_v25, %v700_v24  ;;  %v532_v36 = vadd.f32 %v1505_v49, %v531_v29  ;;  %v1104_v39 = vpop.f32.mrb[30].mxu0  ;;  %v710_v25 = vmax.f32 %v564_v18, 0.0  ;;  %v572_v29 = vadd.f32 %v1517_v63, %v1505_v49 }
 0x120   :  { %v534_v43 = vpop.f32.mrb[31].mxu0  ;;  %v543_v51 = vadd.f32 %v1104_v39, %v1505_v49  ;;  %v704_v53 = vmax.f32 %v540_v44, 0.0  ;;  %v711_v39 = vmax.f32 %v567_v26, 0.0  ;;  %v588_v63 = vadd.f32 %v1549_v27, %v1505_v49 }
 0x121   :  { %v702_v45 = vmax.f32 %v532_v36, 0.0  ;;  %v764_v47 = vadd.f32 %v763_v34, %v701_v32  ;;  %v535_v38 = vadd.f32 %v1505_v49, %v534_v43  ;;  %v575_v36 = vadd.f32 %v1528_v8, %v1505_v49 }
 0x122   :  { %v705_v60 = vmax.f32 %v543_v51, 0.0  ;;  %v712_v43 = vmax.f32 %v572_v29, 0.0  ;;  %v591_v8 = vadd.f32 %v1554_v35, %v1505_v49  ;;  %v604_v27 = vadd.f32 %v1562_v50, %v1505_v49 }
 0x123   :  { %v765_v48 = vadd.f32 %v764_v47, %v702_v45  ;;  %v703_v52 = vmax.f32 %v535_v38, 0.0  ;;  %v713_v45 = vmax.f32 %v575_v36, 0.0  ;;  %v714_v38 = vmax.f32 %v580_v5, 0.0 }
 0x124   :  { %v607_v35 = vadd.f32 %v1566_v56, %v1505_v49  ;;  %v615_v61 = vadd.f32 %v1505_v49, %v1581_v21  ;;  %v620_v50 = vadd.f32 %v1574_v9, %v1505_v49  ;;  %v623_v56 = vadd.f32 %v1578_v16, %v1505_v49 }
 0x125   :  { %v766_v55 = vadd.f32 %v765_v48, %v703_v52  ;;  %v1107_v57 = vpop.f32.mrb[32].mxu0  ;;  %v715_v52 = vmax.f32 %v583_v13, 0.0  ;;  %v726_v26 = vmax.f32 %v628_v14, 0.0  ;;  %v631_v21 = vadd.f32 %v1505_v49, %v1593_v46 }
 0x126   :  { %v547_v59 = vpop.f32.mrb[33].mxu0  ;;  %v556_v7 = vadd.f32 %v1107_v57, %v1505_v49  ;;  %v717_v57 = vmax.f32 %v591_v8, 0.0  ;;  %v636_v9 = vadd.f32 %v1586_v31, %v1505_v49  ;;  %v639_v16 = vadd.f32 %v1590_v40, %v1505_v49 }
 0x127   :  { %v767_v62 = vadd.f32 %v766_v55, %v704_v53  ;;  %v548_v1 = vadd.f32 %v1505_v49, %v547_v59  ;;  %v1108_v3 = vpop.f32.mrb[34].mxu0  ;;  %v716_v53 = vmax.f32 %v588_v63, 0.0  ;;  %v647_v46 = vadd.f32 %v1505_v49, %v1605_v10 }
 0x128   :  { %v550_v4 = vpop.f32.mrb[35].mxu0  ;;  %v559_v15 = vadd.f32 %v1108_v3, %v1505_v49  ;;  %v708_v19 = vmax.f32 %v556_v7, 0.0  ;;  %v719_v3 = vmax.f32 %v599_v41, 0.0  ;;  %v728_v36 = vmax.f32 %v636_v9, 0.0 }
 0x129   :  { %v1623_v6 = vadd.f32 %v767_v62, %v705_v60  ;;  %v551_v11 = vadd.f32 %v1505_v49, %v550_v4  ;;  %v706_v12 = vmax.f32 %v548_v1, 0.0  ;;  %v718_v60 = vmax.f32 %v596_v33, 0.0 }
 0x12a   :  { %v709_v22 = vmax.f32 %v559_v15, 0.0  ;;  %v720_v4 = vmax.f32 %v604_v27, 0.0  ;;  %v722_v15 = vmax.f32 %v612_v54, 0.0  ;;  %v729_v5 = vmax.f32 %v639_v16, 0.0 }
 0x12b   :  { %v707_v17 = vmax.f32 %v551_v11, 0.0  ;;  %v721_v11 = vmax.f32 %v607_v35, 0.0  ;;  %v652_v31 = vadd.f32 %v1598_v58, %v1505_v49  ;;  %v663_v10 = vadd.f32 %v1505_v49, %v1617_v42 }
 0x12c   :  { %v668_v58 = vadd.f32 %v1610_v23, %v1505_v49  ;;  %v737_v41 = vmax.f32 %v671_v28, 0.0 }
 0x12d   :  { %v775_v20 = vadd.f32 %v707_v17, %v706_v12  ;;  %v732_v13 = vmax.f32 %v652_v31, 0.0 }
 0x12f   :  { %v776_v24 = vadd.f32 %v775_v20, %v708_v19  ;;  %v723_v19 = vmax.f32 %v615_v61, 0.0  ;;  %v724_v20 = vmax.f32 %v620_v50, 0.0 }
 0x131   :  { %v777_v32 = vadd.f32 %v776_v24, %v709_v22  ;;  %v725_v24 = vmax.f32 %v623_v56, 0.0 }
 0x133   :  { %v778_v34 = vadd.f32 %v777_v32, %v710_v25 }
 0x135   :  { %v779_v44 = vadd.f32 %v778_v34, %v711_v39  ;;  %v727_v34 = vmax.f32 %v631_v21, 0.0 }
 0x137   :  { %v780_v47 = vadd.f32 %v779_v44, %v712_v43  ;;  %v730_v44 = vmax.f32 %v644_v37, 0.0 }
 0x139   :  { %v781_v48 = vadd.f32 %v780_v47, %v713_v45  ;;  %v655_v47 = vadd.f32 %v1602_v2, %v1505_v49 }
 0x13b   :  { %v782_v51 = vadd.f32 %v781_v48, %v714_v38  ;;  %v731_v38 = vmax.f32 %v647_v46, 0.0  ;;  %v733_v48 = vmax.f32 %v655_v47, 0.0 }
 0x13d   :  { %v783_v55 = vadd.f32 %v782_v51, %v715_v52  ;;  %v769_v51 = vrot.slane %v1623_v6, 4  ;;  %v734_v52 = vmax.f32 %v660_v0, 0.0 }
 0x13f   :  { %v784_v59 = vadd.f32 %v783_v55, %v716_v53  ;;  %v770_v2 = vadd.f32 %v769_v51, %v1623_v6  ;;  %v735_v55 = vmax.f32 %v663_v10, 0.0 }
 0x141   :  { %v785_v62 = vadd.f32 %v784_v59, %v717_v57  ;;  %v736_v57 = vmax.f32 %v668_v58, 0.0 }
 0x143   :  { %v786_v1 = vadd.f32 %v785_v62, %v718_v60  ;;  %v771_v60 = vrot.slane %v770_v2, 2 }
 0x145   :  { %v787_v7 = vadd.f32 %v786_v1, %v719_v3  ;;  %v772_v1 = vadd.f32 %v771_v60, %v770_v2 }
 0x147   :  { %v788_v12 = vadd.f32 %v787_v7, %v720_v4  ;;  %v773_v54 = vrot.slane %v772_v1, 1 }
 0x149   :  { %v789_v17 = vadd.f32 %v788_v12, %v721_v11  ;;  %v774_v4 = vadd.f32 %v773_v54, %v772_v1 }
 0x14b   :  { %v790_v18 = vadd.f32 %v789_v17, %v722_v15  ;;  %v812_v11 = vmul.f32 0.00390625, %v774_v4 }
 0x14d   :  { %v791_v22 = vadd.f32 %v790_v18, %v723_v19 }
 0x14f   :  { %v792_v25 = vadd.f32 %v791_v22, %v724_v20 }
 0x151   :  { %v793_v29 = vadd.f32 %v792_v25, %v725_v24 }
 0x153   :  { %v794_v32 = vadd.f32 %v793_v29, %v726_v26 }
 0x155   :  { %v795_v39 = vadd.f32 %v794_v32, %v727_v34 }
 0x157   :  { %v796_v43 = vadd.f32 %v795_v39, %v728_v36 }
 0x159   :  { %v797_v45 = vadd.f32 %v796_v43, %v729_v5 }
 0x15b   :  { %v798_v40 = vadd.f32 %v797_v45, %v730_v44 }
 0x15d   :  { %v799_v63 = vadd.f32 %v798_v40, %v731_v38 }
 0x15f   :  { %v800_v8 = vadd.f32 %v799_v63, %v732_v13 }
 0x161   :  { %v801_v33 = vadd.f32 %v800_v8, %v733_v48 }
 0x163   :  { %v802_v53 = vadd.f32 %v801_v33, %v734_v52 }
 0x165   :  { %v803_v59 = vadd.f32 %v802_v53, %v735_v55 }
 0x167   :  { %v804_v27 = vadd.f32 %v803_v59, %v736_v57 }
 0x169   :  { %v805_v62 = vadd.f32 %v804_v27, %v737_v41 }
 0x16b   :  { %v806_v35 = vrot.slane %v805_v62, 4 }
 0x16d   :  { %v807_v42 = vadd.f32 %v806_v35, %v805_v62 }
 0x16f   :  { %v808_v3 = vrot.slane %v807_v42, 2 }
 0x171   :  { %v809_v23 = vadd.f32 %v808_v3, %v807_v42 }
 0x173   :  { %v810_v7 = vrot.slane %v809_v23, 1 }
 0x175   :  { %v811_v6 = vadd.f32 %v810_v7, %v809_v23 }
 0x177   :  { %v813_v12 = vmul.f32 0.00390625, %v811_v6 }
 0x179   :  { %v817_v49 = vsel %vm816_vm2, %v813_v12, %v812_v11 }
 0x17a   :  { %1170 = vmatmul.mubr.f32.vlgmr.msra.gmra.mrb[28].mxu1 %v817_v49  ;;  %819 = vst [vmem:[#allocation2] sm:$0x3] %v817_v49 }
 0x17b   :  { %1256 = shalt.err (!%p1253_p4)
}
 0x17c   :  { %s1257_s28 = scalar_lea.hbm %s1718_s5, 32 }
 0x17d   :  { %p1258_p5 = scmp.ne.s32.totalorder %s1718_s5, %s1257_s28  ;;  %p1261_p6 = scmp.lt.u32.totalorder %s1257_s28, %s1718_s5 }
 0x17f   :  { %p1263_p7 = pnand %p1261_p6, %p1258_p5 }
 0x181   :  { %1266 = shalt.err (!%p1263_p7)
}
 0x182   :  { %923 = dma.vmem_to_hbm [thread:$0]  %s921_s24, 32, %s1718_s5, [#allocation3]   ;;  %v1011_v30 = vld [vmem:[%s1717_s4] ss:$0 sm:$0xff] }
 0x183   :  { %s1297_s12 = smov [#allocation4]  }
 0x184   :  { %s930_s13 = sshll.u32 %s1297_s12, 4  ;;  %s931_s13 = int_to_ptr.vmem [resolvable:$true] %s930_s13 }
 0x185   :  { %s1267_s2 = scalar_lea.vmem %s931_s13, 32  ;;  %p1272_p9 = scmp.lt.s32.totalorder %s931_s13, %s931_s13 }
 0x186   :  { %p1268_p8 = scmp.ne.s32.totalorder %s931_s13, %s1267_s2  ;;  %p1273_p10 = scmp.lt.s32.totalorder %s1267_s2, %s1267_s2 }
 0x188   :  { %p1274_p11 = por %p1273_p10, %p1272_p9 }
 0x18a   :  { %p1275_p12 = pnand %p1274_p11, %p1268_p8 }
 0x24d   :  { %v909_v15 = vpop.f32.mrb[28].mxu1 }
 0x24e   :  { %v910_v61 = vadd.f32 %v1011_v30, %v909_v15  ;;  %v1171_v50 = vpop.f32.mrb[29].mxu1 }
 0x250   :  { %913 = vst [vmem:[#allocation4] sm:$0x3] %v910_v61 }
 0x251   :  { %1278 = shalt.err (!%p1275_p12)
}
 0x252   :  { %s1279_s15 = scalar_lea.hbm %s1719_s6, 32 }
 0x253   :  { %p1280_p13 = scmp.ne.s32.totalorder %s1719_s6, %s1279_s15  ;;  %p1283_p0 = scmp.lt.u32.totalorder %s1279_s15, %s1719_s6 }
 0x255   :  { %p1285_p1 = pnand %p1283_p0, %p1280_p13 }
 0x257   :  { %1288 = shalt.err (!%p1285_p1)
}
 0x258   :  { %933 = dma.vmem_to_hbm [thread:$0]  %s931_s13, 32, %s1719_s6, [#allocation5]  }
 0x259   :  { %1289 = dma.done.wait [#allocation3], 32  }
 0x25a   :  { %1290 = vsyncadd [#allocation3], 4294967264 }
 0x25b   :  { %1291 = dma.done.wait [#allocation5], 32  }
 0x25c   :  { %1292 = vsyncadd [#allocation5], 4294967264 }
 0x25d   :  { %940 = vsyncpa [#allocation3], 1 }
 0x25e   :  { %941 = vsyncpa [#allocation5], 1 }

</bundles_post_ra>
